<compile_context>
chip_gen: v7x
topology: tpu7x:2x2x1
jax: 0.10.0
libtpu: 0.0.40
codegen_flags: <defaults>
</compile_context>

<pallas_src>
import functools

import jax
import jax.numpy as jnp
from jax.experimental import pallas as pl
from jax.experimental.pallas import tpu as pltpu

LANES = 128
_TARGET_BLOCK_BYTES = 4 * 1024 * 1024   # per input, per pipeline buffer
_VMEM_LIMIT_BYTES = 32 * 1024 * 1024    # explicit: bumps v5e's 16 MiB default


def _default_num_cores():
    """2 TensorCores per chip on v7x, 1 on v5e/v6e. Fallback: 1 (always safe)."""
    try:
        kind = jax.devices()[0].device_kind.lower()
    except Exception:
        return 1
    return 2 if "v7" in kind else 1


def _dgsc_loss_kernel(rec_ref, img_ref, out_ref, acc_ref, *,
                      block_rows, max_blk, tail_rows, needs_mask, needs_skip,
                      scale):
    """Streaming sum((rec-img)^2) with a resident (8,128) f32 VMEM accumulator."""
    j = pl.program_id(1)          # sequential reduction axis
    nj = pl.num_programs(1)

    @pl.when(j == 0)
    def _():
        acc_ref[...] = jnp.zeros_like(acc_ref)

    def _accumulate(masked):
        d = rec_ref[...].astype(jnp.float32) - img_ref[...].astype(jnp.float32)
        d2 = d * d
        if masked:
            # Only the last (partial) block: rows past the real array extent
            # hold unspecified data; select (NOT multiply) discards them.
            ridx = jax.lax.broadcasted_iota(jnp.int32, (block_rows, LANES), 0)
            d2 = jnp.where(ridx < tail_rows, d2, jnp.float32(0.0))
        # (br,128) -> (br//8, 8, 128): vreg-aligned split; sum over axis 0 is
        # pure cross-vreg VALU adds into a full-vreg accumulator.
        acc_ref[...] += d2.reshape(block_rows // 8, 8, LANES).sum(axis=0)

    if not (needs_mask or needs_skip):
        # Everything divides evenly: completely mask-free hot loop.
        _accumulate(masked=False)
    else:
        p = pl.program_id(0)
        blk = p * nj + j

        @pl.when(blk < max_blk)
        def _():
            _accumulate(masked=False)

        @pl.when(blk == max_blk)
        def _():
            _accumulate(masked=needs_mask)
        # blk > max_blk: clamped duplicate fetch -> contribute nothing.

    @pl.when(j == nj - 1)
    def _():
        # Per-core (8,128) partial sums, already scaled by rec_coeff / N.
        out_ref[0] = acc_ref[...] * jnp.float32(scale)


def dgsc_loss(rec, img, rec_coeff, *, block_rows=None, num_cores=None):
    """total_loss = rec_coeff * mean((rec - img)**2), computed in Pallas.

    rec_coeff is a compile-time Python scalar folded into the final scale.
    """
    assert rec.shape == img.shape, "rec and img must have the same shape"
    if img.dtype != rec.dtype:
        img = img.astype(rec.dtype)

    n = 1
    for s in rec.shape:
        n *= s
    assert n > 0, "inputs must be non-empty"

    flat_r = rec.reshape(-1)
    flat_i = img.reshape(-1)

    # Lane alignment: only pad when numel % 128 != 0 (padded zeros add 0).
    pad = (-n) % LANES
    if pad:
        flat_r = jnp.pad(flat_r, (0, pad))
        flat_i = jnp.pad(flat_i, (0, pad))
    rows = (n + pad) // LANES
    r2 = flat_r.reshape(rows, LANES)
    i2 = flat_i.reshape(rows, LANES)

    itemsize = jnp.dtype(rec.dtype).itemsize
    sublane = max(8, 32 // itemsize)          # 8 f32, 16 bf16, 32 int8/fp8
    if block_rows is None:
        # Constant bytes/step across dtypes (~4 MiB per input per buffer).
        block_rows = max(sublane, _TARGET_BLOCK_BYTES // (LANES * itemsize))

    br = min(block_rows, rows)
    br = ((br + sublane - 1) // sublane) * sublane
    row_blocks = pl.cdiv(rows, br)

    if num_cores is None:
        num_cores = _default_num_cores()
    num_par = 1
    if num_cores > 1 and row_blocks >= num_cores:
        # Only split across TensorCores when any clamped duplicate block is a
        # negligible fraction of the streamed bytes.
        if row_blocks % num_cores == 0 or row_blocks >= 16:
            num_par = num_cores

    blocks_per_core = pl.cdiv(row_blocks, num_par)
    max_blk = row_blocks - 1
    tail_rows = rows - max_blk * br           # 1..br rows in the last block
    needs_mask = (tail_rows != br)
    needs_skip = (num_par * blocks_per_core != row_blocks)

    def in_map(p, j):
        # Clamp so the DMA never targets a block past the array; the kernel
        # skips compute on clamped duplicates and masks the partial tail.
        return (jnp.minimum(p * blocks_per_core + j, max_blk), 0)

    kernel = functools.partial(
        _dgsc_loss_kernel,
        block_rows=br,
        max_blk=max_blk,
        tail_rows=tail_rows,
        needs_mask=needs_mask,
        needs_skip=needs_skip,
        scale=float(rec_coeff) / float(n),
    )

    cost = pl.CostEstimate(
        flops=3 * n,
        transcendentals=0,
        bytes_accessed=2 * rows * LANES * itemsize + num_par * 8 * LANES * 4,
    )

    partials = pl.pallas_call(
        kernel,
        out_shape=jax.ShapeDtypeStruct((num_par, 8, LANES), jnp.float32),
        grid_spec=pltpu.PrefetchScalarGridSpec(
            num_scalar_prefetch=0,
            grid=(num_par, blocks_per_core),
            in_specs=[
                pl.BlockSpec((br, LANES), in_map),
                pl.BlockSpec((br, LANES), in_map),
            ],
            out_specs=pl.BlockSpec((1, 8, LANES), lambda p, j: (p, 0, 0)),
            scratch_shapes=[pltpu.VMEM((8, LANES), jnp.float32)],
        ),
        compiler_params=pltpu.CompilerParams(
            dimension_semantics=("parallel", "arbitrary"),
            vmem_limit_bytes=_VMEM_LIMIT_BYTES,
        ),
        cost_estimate=cost,
    )(r2, i2)

    # Tiny final reduce of the per-core (8,128) partials (already scaled).
    return jnp.sum(partials)


if __name__ == "__main__":
    # Emulate `args` with the single field the forward uses.
    class Args:
        rec_coeff = 0.5

    key = jax.random.PRNGKey(0)
    k_rec, k_img = jax.random.split(key)

    # Small NCHW shapes consistent with an image-reconstruction loss.
    rec = jax.random.normal(k_rec, (2, 4, 16, 16), dtype=jnp.float32)
    img = jax.random.normal(k_img, (2, 4, 16, 16), dtype=jnp.float32)

    total_loss = dgsc_loss(rec, img, Args.rec_coeff)
    total_loss = jax.block_until_ready(total_loss)

    # Reference check (pure JAX) against the Pallas kernel.
    ref = Args.rec_coeff * jnp.mean((rec - img) ** 2)
    assert jnp.allclose(total_loss, ref, rtol=1e-5, atol=1e-6), (total_loss, ref)

    print("KERNEL_OK")
</pallas_src>

<mosaic_0001>
module attributes {stable_mosaic.version = 11 : i64} {
  func.func @_dgsc_loss_kernel(%arg0: i32, %arg1: i32, %arg2: memref<16x128xf32, #tpu.memory_space<vmem>>, %arg3: memref<16x128xf32, #tpu.memory_space<vmem>>, %arg4: memref<1x8x128xf32, #tpu.memory_space<vmem>>, %arg5: memref<8x128xf32, #tpu.memory_space<vmem>>) attributes {dimension_semantics = [#tpu.dimension_semantics<parallel>, #tpu.dimension_semantics<arbitrary>], iteration_bounds = array<i64: 1, 1>, scalar_prefetch = 0 : i64, scratch_operands = 1 : i64, tpu.core_type = #tpu.core_type<tc>, window_params = [{transform_indices = @transform_0, window_bounds = array<i64: 16, 128>}, {transform_indices = @transform_1, window_bounds = array<i64: 16, 128>}, {transform_indices = @transform_2, window_bounds = array<i64: 1, 8, 128>}]} {
    %c0_i32 = arith.constant 0 : i32
    %0 = arith.cmpi eq, %arg1, %c0_i32 : i32
    %1 = arith.extui %0 : i1 to i32
    %c0_i32_0 = arith.constant 0 : i32
    %2 = arith.cmpi ne, %1, %c0_i32_0 : i32
    scf.if %2 {
      %cst_10 = arith.constant 0.000000e+00 : f32
      %15 = vector.broadcast %cst_10 : f32 to vector<8x128xf32>
      %c0_11 = arith.constant 0 : index
      %c0_12 = arith.constant 0 : index
      %16 = vector.load %arg5[%c0_11, %c0_12] : memref<8x128xf32, #tpu.memory_space<vmem>>, vector<8x128xf32>
      tpu.vector_store %arg5[%c0_11, %c0_12], %15 {strides = array<i32>} : memref<8x128xf32, #tpu.memory_space<vmem>>, vector<8x128xf32>,
    } else {
    }
    %c0 = arith.constant 0 : index
    %c0_1 = arith.constant 0 : index
    %3 = vector.load %arg2[%c0, %c0_1] : memref<16x128xf32, #tpu.memory_space<vmem>>, vector<16x128xf32>
    %c0_2 = arith.constant 0 : index
    %c0_3 = arith.constant 0 : index
    %4 = vector.load %arg3[%c0_2, %c0_3] : memref<16x128xf32, #tpu.memory_space<vmem>>, vector<16x128xf32>
    %5 = arith.subf %3, %4 : vector<16x128xf32>
    %6 = arith.mulf %5, %5 : vector<16x128xf32>
    %c0_4 = arith.constant 0 : index
    %c0_5 = arith.constant 0 : index
    %7 = vector.load %arg5[%c0_4, %c0_5] : memref<8x128xf32, #tpu.memory_space<vmem>>, vector<8x128xf32>
    %8 = vector.shape_cast %6 : vector<16x128xf32> to vector<2x8x128xf32>
    %cst = arith.constant dense<0.000000e+00> : vector<8x128xf32>
    %9 = vector.multi_reduction <add>, %8, %cst [0] : vector<2x8x128xf32> to vector<8x128xf32>
    %10 = arith.addf %7, %9 : vector<8x128xf32>
    %c0_6 = arith.constant 0 : index
    %c0_7 = arith.constant 0 : index
    %11 = vector.load %arg5[%c0_6, %c0_7] : memref<8x128xf32, #tpu.memory_space<vmem>>, vector<8x128xf32>
    tpu.vector_store %arg5[%c0_6, %c0_7], %10 {strides = array<i32>} : memref<8x128xf32, #tpu.memory_space<vmem>>, vector<8x128xf32>,
    %c0_i32_8 = arith.constant 0 : i32
    %12 = arith.cmpi eq, %arg1, %c0_i32_8 : i32
    %13 = arith.extui %12 : i1 to i32
    %c0_i32_9 = arith.constant 0 : i32
    %14 = arith.cmpi ne, %13, %c0_i32_9 : i32
    scf.if %14 {
      %c0_10 = arith.constant 0 : index
      %c0_11 = arith.constant 0 : index
      %15 = vector.load %arg5[%c0_10, %c0_11] : memref<8x128xf32, #tpu.memory_space<vmem>>, vector<8x128xf32>
      %cst_12 = arith.constant 2.44140625E-4 : f32
      %16 = vector.broadcast %cst_12 : f32 to vector<8x128xf32>
      %17 = arith.mulf %15, %16 : vector<8x128xf32>
      %c0_13 = arith.constant 0 : index
      %c0_14 = arith.constant 0 : index
      %c0_15 = arith.constant 0 : index
      %18 = vector.load %arg4[%c0_13, %c0_14, %c0_15] : memref<1x8x128xf32, #tpu.memory_space<vmem>>, vector<1x8x128xf32>
      %19 = vector.shape_cast %18 : vector<1x8x128xf32> to vector<8x128xf32>
      %20 = vector.shape_cast %17 : vector<8x128xf32> to vector<1x8x128xf32>
      tpu.vector_store %arg4[%c0_13, %c0_14, %c0_15], %20 {strides = array<i32>} : memref<1x8x128xf32, #tpu.memory_space<vmem>>, vector<1x8x128xf32>,
    } else {
    }
    return
  }
  func.func @transform_0(%arg0: i32, %arg1: i32) -> (i32, i32) {
    %c1_i32 = arith.constant 1 : i32
    %0 = arith.muli %arg0, %c1_i32 : i32
    %1 = arith.addi %0, %arg1 : i32
    %c0_i32 = arith.constant 0 : i32
    %2 = arith.minsi %1, %c0_i32 : i32
    %c0_i32_0 = arith.constant 0 : i32
    %c0_i32_1 = arith.constant 0 : i32
    return %2, %c0_i32_0 : i32, i32
  }
  func.func @transform_1(%arg0: i32, %arg1: i32) -> (i32, i32) {
    %c1_i32 = arith.constant 1 : i32
    %0 = arith.muli %arg0, %c1_i32 : i32
    %1 = arith.addi %0, %arg1 : i32
    %c0_i32 = arith.constant 0 : i32
    %2 = arith.minsi %1, %c0_i32 : i32
    %c0_i32_0 = arith.constant 0 : i32
    %c0_i32_1 = arith.constant 0 : i32
    return %2, %c0_i32_0 : i32, i32
  }
  func.func @transform_2(%arg0: i32, %arg1: i32) -> (i32, i32, i32) {
    %c0_i32 = arith.constant 0 : i32
    %c0_i32_0 = arith.constant 0 : i32
    %c0_i32_1 = arith.constant 0 : i32
    return %arg0, %c0_i32, %c0_i32_0 : i32, i32, i32
  }
}

</mosaic_0001>

<bundles_post_ra>
// kernel: tpu_custom_call.1
= control target key start
LH: loop header
LB: loop body
LE: loop exit
PB: predicated region body
PF: predicated region fallthrough
CT: control target
= control target key end

     0   :  { %7 = vsyncpa [#allocation4], 0  ;;  %s236_s0 = inlined_call_operand.hbm [shape: f32[16,128], index: 0, kind: input, shape index: {}]   ;;  %s237_s1 = inlined_call_operand.hbm [shape: f32[16,128], index: 1, kind: input, shape index: {}]   ;;  %s238_s2 = inlined_call_operand.hbm [shape: f32[1,8,128], index: 2, kind: output, shape index: {}]  }
   0x1   :  { %8 = vsyncpa [#allocation7], 0 }
   0x2   :  { %9 = vsyncpa [#allocation5], 0  ;;  %s180_s9 = smov [#allocation3]   ;;  %s108_s13 = scalar_lea.hbm %s236_s0, 256 }
   0x3   :  { %s21_s10 = sshll.u32 %s180_s9, 4  ;;  %p109_p0 = scmp.ne.s32.totalorder %s236_s0, %s108_s13  ;;  %s22_s10 = int_to_ptr.vmem [resolvable:$true] %s21_s10 }
   0x4   :  { %p112_p1 = scmp.lt.u32.totalorder %s108_s13, %s236_s0 }
   0x6   :  { %p114_p2 = pnand %p112_p1, %p109_p0 }
   0x8   :  { %117 = shalt.err (!%p114_p2)
}
   0x9   :  { %s118_s18 = scalar_lea.vmem %s22_s10, 256  ;;  %p123_p4 = scmp.lt.s32.totalorder %s22_s10, %s22_s10 }
   0xa   :  { %p119_p3 = scmp.ne.s32.totalorder %s22_s10, %s118_s18  ;;  %p124_p5 = scmp.lt.s32.totalorder %s118_s18, %s118_s18 }
   0xc   :  { %p125_p6 = por %p124_p5, %p123_p4 }
   0xe   :  { %p126_p7 = pnand %p125_p6, %p119_p3 }
  0x10   :  { %129 = shalt.err (!%p126_p7)
}
  0x11   :  { %s181_s19 = smov 128   ;;  %s182_s20 = smov 8  }
  0x12   :  { %27 = dma.hbm_to_vmem [thread:$0]  %s236_s0, 256, %s22_s10, [#allocation4], %s181_s19, %s181_s19, %s182_s20  }
  0x13   :  { %s183_s23 = smov [#allocation6]   ;;  %s130_s27 = scalar_lea.hbm %s237_s1, 256 }
  0x14   :  { %s39_s24 = sshll.u32 %s183_s23, 4  ;;  %p131_p8 = scmp.ne.s32.totalorder %s237_s1, %s130_s27  ;;  %s40_s24 = int_to_ptr.vmem [resolvable:$true] %s39_s24 }
  0x15   :  { %p134_p9 = scmp.lt.u32.totalorder %s130_s27, %s237_s1 }
  0x17   :  { %p136_p10 = pnand %p134_p9, %p131_p8 }
  0x19   :  { %139 = shalt.err (!%p136_p10)
}
  0x1a   :  { %s140_s4 = scalar_lea.vmem %s40_s24, 256  ;;  %p145_p12 = scmp.lt.s32.totalorder %s40_s24, %s40_s24 }
  0x1b   :  { %p141_p11 = scmp.ne.s32.totalorder %s40_s24, %s140_s4  ;;  %p146_p13 = scmp.lt.s32.totalorder %s140_s4, %s140_s4 }
  0x1d   :  { %p147_p0 = por %p146_p13, %p145_p12 }
  0x1f   :  { %p148_p1 = pnand %p147_p0, %p141_p11 }
  0x21   :  { %151 = shalt.err (!%p148_p1)
}
  0x22   :  { %45 = dma.hbm_to_vmem [thread:$0]  %s237_s1, 256, %s40_s24, [#allocation7], %s181_s19, %s181_s19, %s182_s20  }
  0x23   :  { %174 = dma.done.wait [#allocation4], 256  }
  0x24   :  { %175 = vsyncadd [#allocation4], 4294967040 }
  0x25   :  { %176 = dma.done.wait [#allocation7], 256  }
  0x26   :  { %177 = vsyncadd [#allocation7], 4294967040  ;;  %v65_v0 = vld [vmem:[#allocation3] sm:$0xff]  ;;  %v66_v1 = vld [vmem:[#allocation3 + $0x8] sm:$0xff]  ;;  %s184_s6 = smov [#allocation8]  }
  0x27   :  { %v67_v2 = vld [vmem:[#allocation6] sm:$0xff]  ;;  %v68_v3 = vld [vmem:[#allocation6 + $0x8] sm:$0xff]  ;;  %s89_s7 = sshll.u32 %s184_s6, 4  ;;  %s90_s7 = int_to_ptr.vmem [resolvable:$true] %s89_s7 }
  0x28   :  { %v69_v4 = vsub.f32 %v65_v0, %v67_v2  ;;  %v70_v5 = vsub.f32 %v66_v1, %v68_v3  ;;  %s152_s8 = scalar_lea.vmem %s90_s7, 128  ;;  %p157_p3 = scmp.lt.s32.totalorder %s90_s7, %s90_s7 }
  0x29   :  { %p153_p2 = scmp.ne.s32.totalorder %s90_s7, %s152_s8  ;;  %p158_p4 = scmp.lt.s32.totalorder %s152_s8, %s152_s8 }
  0x2a   :  { %v71_v6 = vmul.f32 %v69_v4, %v69_v4  ;;  %v72_v7 = vmul.f32 %v70_v5, %v70_v5 }
  0x2b   :  { %p159_p5 = por %p158_p4, %p157_p3 }
  0x2c   :  { %v74_v8 = vadd.f32 %v72_v7, %v71_v6 }
  0x2d   :  { %p160_p6 = pnand %p159_p5, %p153_p2 }
  0x2e   :  { %v81_v9 = vmul.f32 0.00024414063, %v74_v8 }
  0x30   :  { %82 = vst [vmem:[#allocation8] sm:$0xff] %v81_v9 }
  0x31   :  { %163 = shalt.err (!%p160_p6)
}
  0x32   :  { %s164_s10 = scalar_lea.hbm %s238_s2, 128 }
  0x33   :  { %p165_p7 = scmp.ne.s32.totalorder %s238_s2, %s164_s10  ;;  %p168_p8 = scmp.lt.u32.totalorder %s164_s10, %s238_s2 }
  0x35   :  { %p170_p9 = pnand %p168_p8, %p165_p7 }
  0x37   :  { %173 = shalt.err (!%p170_p9)
}
  0x38   :  { %92 = dma.vmem_to_hbm [thread:$0]  %s90_s7, 128, %s238_s2, [#allocation5]  }
  0x39   :  { %178 = dma.done.wait [#allocation5], 128  }
  0x3a   :  { %179 = vsyncadd [#allocation5], 4294967168 }
  0x3b   :  { %96 = vsyncpa [#allocation4], 1 }
  0x3c   :  { %97 = vsyncpa [#allocation7], 1 }
  0x3d   :  { %98 = vsyncpa [#allocation5], 1 }

</bundles_post_ra>
